<compile_context>
chip_gen: v6e
topology: v6e:2x2x1
jax: 0.10.0
libtpu: 0.0.40
codegen_flags: <defaults>
</compile_context>

<pallas_src>
import functools

import jax
import jax.numpy as jnp
from jax.experimental import pallas as pl
from jax.experimental.pallas import tpu as pltpu


D_IN = 784
D_H = 256
D_OUT = 10
D_OUT_PAD = 128     # lane-dense class dim (padded lanes masked with -inf bias)


def _round_up(n, m):
    return ((n + m - 1) // m) * m


def _disc_kernel(x_ref, w1_ref, b1_ref, w2_ref, b2_ref, w3_ref, b3_ref, o_ref):
    # Cast the f32 activation tile to bf16 under the DMA (VPU), feed the MXU with
    # bf16 inputs and accumulate in f32.
    x = x_ref[...].astype(jnp.bfloat16)

    # Layer 1: Linear(784->256) + LeakyReLU(0.2)
    h1 = jnp.dot(x, w1_ref[...], preferred_element_type=jnp.float32)
    h1 = h1 + b1_ref[...]                       # (1, 256) bias broadcasts over batch
    h1 = jnp.maximum(h1, 0.2 * h1)

    # Layer 2: Linear(256->256) + LeakyReLU(0.2)
    h2 = jnp.dot(h1.astype(jnp.bfloat16), w2_ref[...],
                 preferred_element_type=jnp.float32)
    h2 = h2 + b2_ref[...]
    h2 = jnp.maximum(h2, 0.2 * h2)

    # Layer 3: Linear(256->128 padded) + Softmax.  Padded class lanes have zero
    # weight columns and -inf bias, so exp() there is exactly 0 and the softmax
    # normalization only sees the 10 real classes.
    logits = jnp.dot(h2.astype(jnp.bfloat16), w3_ref[...],
                     preferred_element_type=jnp.float32)
    logits = logits + b3_ref[...]
    m = jnp.max(logits, axis=-1, keepdims=True)
    e = jnp.exp(logits - m)
    inv = pl.reciprocal(jnp.sum(e, axis=-1, keepdims=True), approx=True)
    o_ref[...] = (e * inv).astype(o_ref.dtype)


def prepare_params(w1, b1, w2, b2, w3, b3):
    """Pad + cast params ([in,out] weights f32, [out] biases f32) for the kernel."""
    w1p = w1.astype(jnp.bfloat16)                              # (784, 256)
    w2p = w2.astype(jnp.bfloat16)                              # (256, 256)
    # NOTE: padded w3 columns must stay exactly zero (softmax masking invariant).
    w3p = (jnp.zeros((D_H, D_OUT_PAD), jnp.float32)
           .at[:, :D_OUT].set(w3).astype(jnp.bfloat16))        # (256, 128)
    b1p = b1.reshape(1, D_H).astype(jnp.float32)
    b2p = b2.reshape(1, D_H).astype(jnp.float32)
    b3p = jnp.full((1, D_OUT_PAD), -jnp.inf, jnp.float32).at[0, :D_OUT].set(b3)
    return w1p, b1p, w2p, b2p, w3p, b3p


def _choose_tile(B, tb):
    """Pick a batch tile (multiple of 16) and the padded batch size."""
    tb = max(16, (tb // 16) * 16)
    B16 = _round_up(B, 16)
    TB = min(tb, B16)
    # Ensure >=2 grid steps whenever the batch allows it so both v7x TensorCores
    # get work under dimension_semantics=("parallel",).
    if B16 > 16:
        TB = min(TB, _round_up((B16 + 1) // 2, 16))
    Bp = _round_up(B, TB)
    return TB, Bp


@functools.partial(jax.jit, static_argnames=("tb",))
def discriminator_forward(x, w1p, b1p, w2p, b2p, w3p, b3p, *, tb=1024):
    """x: (B, 784) f32.  Returns softmax probabilities (B, 10) f32."""
    B = x.shape[0]
    TB, Bp = _choose_tile(B, tb)

    # Only pad batch rows when needed (no K padding, no wrapper-side cast).
    if Bp != B:
        x = jnp.pad(x, ((0, Bp - B), (0, 0)))

    grid = (Bp // TB,)

    def const(shape):
        return pl.BlockSpec(shape, lambda i: (0,) * len(shape))

    flops = 2 * Bp * (D_IN * D_H + D_H * D_H + D_H * D_OUT_PAD)
    bytes_accessed = (
        Bp * D_IN * 4                                    # x (f32 in HBM)
        + (w1p.size + w2p.size + w3p.size) * 2           # bf16 weights
        + (b1p.size + b2p.size + b3p.size) * 4           # f32 biases
        + Bp * D_OUT_PAD * 2                             # bf16 output
    )

    out = pl.pallas_call(
        _disc_kernel,
        out_shape=jax.ShapeDtypeStruct((Bp, D_OUT_PAD), jnp.bfloat16),
        grid=grid,
        in_specs=[
            pl.BlockSpec((TB, D_IN), lambda i: (i, 0)),   # x: tiled over batch only
            const(w1p.shape),                             # weights/biases resident
            const(b1p.shape),
            const(w2p.shape),
            const(b2p.shape),
            const(w3p.shape),
            const(b3p.shape),
        ],
        out_specs=pl.BlockSpec((TB, D_OUT_PAD), lambda i: (i, 0)),
        compiler_params=pltpu.CompilerParams(
            dimension_semantics=("parallel",),
        ),
        cost_estimate=pl.CostEstimate(
            flops=int(flops),
            transcendentals=int(Bp * D_OUT_PAD),
            bytes_accessed=int(bytes_accessed),
        ),
    )(x, w1p, b1p, w2p, b2p, w3p, b3p)

    # Slice off padded batch rows / class lanes; return f32 like the PyTorch module.
    return out[:B, :D_OUT].astype(jnp.float32)


def _init_linear(key, fan_in, fan_out):
    # Deterministic init mimicking PyTorch's default U(-1/sqrt(fan_in), +1/sqrt(fan_in)).
    kw, kb = jax.random.split(key)
    bound = 1.0 / (fan_in ** 0.5)
    w = jax.random.uniform(kw, (fan_in, fan_out), jnp.float32, -bound, bound)
    b = jax.random.uniform(kb, (fan_out,), jnp.float32, -bound, bound)
    return w, b


def _reference_bf16(x, w1p, b1p, w2p, b2p, w3p, b3p):
    """Pure-JAX reference following the same bf16-matmul / f32-accumulate path."""
    h1 = jnp.dot(x.astype(jnp.bfloat16), w1p, preferred_element_type=jnp.float32) + b1p
    h1 = jnp.maximum(h1, 0.2 * h1)
    h2 = jnp.dot(h1.astype(jnp.bfloat16), w2p, preferred_element_type=jnp.float32) + b2p
    h2 = jnp.maximum(h2, 0.2 * h2)
    logits = jnp.dot(h2.astype(jnp.bfloat16), w3p, preferred_element_type=jnp.float32) + b3p
    return jax.nn.softmax(logits, axis=-1)[:, :D_OUT]


def _reference_f32(x, w1, b1, w2, b2, w3, b3):
    """Full-precision reference of the original module semantics."""
    h1 = x @ w1 + b1
    h1 = jnp.where(h1 > 0, h1, 0.2 * h1)
    h2 = h1 @ w2 + b2
    h2 = jnp.where(h2 > 0, h2, 0.2 * h2)
    return jax.nn.softmax(h2 @ w3 + b3, axis=-1)


if __name__ == "__main__":
    key = jax.random.PRNGKey(0)
    kx, k1, k2, k3 = jax.random.split(key, 4)

    B = 8
    x = jax.random.normal(kx, (B, D_IN), jnp.float32)

    w1, b1 = _init_linear(k1, D_IN, D_H)
    w2, b2 = _init_linear(k2, D_H, D_H)
    w3, b3 = _init_linear(k3, D_H, D_OUT)

    params = prepare_params(w1, b1, w2, b2, w3, b3)

    out = discriminator_forward(x, *params)
    jax.block_until_ready(out)

    assert out.shape == (B, D_OUT)
    assert bool(jnp.all(jnp.isfinite(out)))
    # bf16 output rounding → loose-ish sum tolerance.
    assert jnp.allclose(jnp.sum(out, axis=-1), 1.0, atol=1e-2)
    # Check vs. a reference that follows the same bf16/f32 numerics (plus bf16 store).
    assert jnp.allclose(out, _reference_bf16(x, *params), atol=1e-2, rtol=1e-2)
    # Loose check vs. the full-f32 module semantics (bf16 rounding tolerance).
    assert jnp.allclose(out, _reference_f32(x, w1, b1, w2, b2, w3, b3), atol=3e-2)

    # Exercise batch padding + a multi-step grid (B not a multiple of the tile).
    B2 = 37
    x2 = jax.random.normal(jax.random.PRNGKey(1), (B2, D_IN), jnp.float32)
    out2 = discriminator_forward(x2, *params, tb=32)
    jax.block_until_ready(out2)
    assert out2.shape == (B2, D_OUT)
    assert jnp.allclose(jnp.sum(out2, axis=-1), 1.0, atol=1e-2)
    assert jnp.allclose(out2, _reference_bf16(x2, *params), atol=1e-2, rtol=1e-2)
    assert jnp.allclose(out2, _reference_f32(x2, w1, b1, w2, b2, w3, b3), atol=3e-2)

    print("KERNEL_OK")
</pallas_src>

<mosaic_0001>
module attributes {stable_mosaic.version = 11 : i64} {
  func.func @_disc_kernel(%arg0: i32, %arg1: memref<16x784xf32, #tpu.memory_space<vmem>>, %arg2: memref<784x256xbf16, #tpu.memory_space<vmem>>, %arg3: memref<1x256xf32, #tpu.memory_space<vmem>>, %arg4: memref<256x256xbf16, #tpu.memory_space<vmem>>, %arg5: memref<1x256xf32, #tpu.memory_space<vmem>>, %arg6: memref<256x128xbf16, #tpu.memory_space<vmem>>, %arg7: memref<1x128xf32, #tpu.memory_space<vmem>>, %arg8: memref<16x128xbf16, #tpu.memory_space<vmem>>) attributes {dimension_semantics = [#tpu.dimension_semantics<parallel>], iteration_bounds = array<i64: 1>, scalar_prefetch = 0 : i64, scratch_operands = 0 : i64, tpu.core_type = #tpu.core_type<tc>, window_params = [{transform_indices = @transform_0, window_bounds = array<i64: 16, 784>}, {pipeline_mode = #tpu.pipeline_mode<synchronous>, transform_indices = @transform_1, window_bounds = array<i64: 784, 256>}, {pipeline_mode = #tpu.pipeline_mode<synchronous>, transform_indices = @transform_2, window_bounds = array<i64: 1, 256>}, {pipeline_mode = #tpu.pipeline_mode<synchronous>, transform_indices = @transform_3, window_bounds = array<i64: 256, 256>}, {pipeline_mode = #tpu.pipeline_mode<synchronous>, transform_indices = @transform_4, window_bounds = array<i64: 1, 256>}, {pipeline_mode = #tpu.pipeline_mode<synchronous>, transform_indices = @transform_5, window_bounds = array<i64: 256, 128>}, {pipeline_mode = #tpu.pipeline_mode<synchronous>, transform_indices = @transform_6, window_bounds = array<i64: 1, 128>}, {transform_indices = @transform_7, window_bounds = array<i64: 16, 128>}]} {
    %c0 = arith.constant 0 : index
    %c0_0 = arith.constant 0 : index
    %0 = vector.load %arg1[%c0, %c0_0] : memref<16x784xf32, #tpu.memory_space<vmem>>, vector<16x784xf32>
    %1 = arith.truncf %0 : vector<16x784xf32> to vector<16x784xbf16>
    %c0_1 = arith.constant 0 : index
    %c0_2 = arith.constant 0 : index
    %2 = vector.load %arg2[%c0_1, %c0_2] : memref<784x256xbf16, #tpu.memory_space<vmem>>, vector<784x256xbf16>
    %cst = arith.constant dense<0.000000e+00> : vector<16x256xf32>
    %3 = tpu.matmul %1, %2, %cst {dimension_numbers = #tpu.dot_dimension_numbers<[1], [0], [0], [1], [0, 0, 1, 1], [], []>} : vector<16x784xbf16>, vector<784x256xbf16>, vector<16x256xf32> -> vector<16x256xf32>
    %c0_3 = arith.constant 0 : index
    %c0_4 = arith.constant 0 : index
    %4 = vector.load %arg3[%c0_3, %c0_4] : memref<1x256xf32, #tpu.memory_space<vmem>>, vector<1x256xf32>
    %5 = vector.broadcast %4 : vector<1x256xf32> to vector<16x256xf32>
    %6 = arith.addf %3, %5 : vector<16x256xf32>
    %cst_5 = arith.constant 2.000000e-01 : f32
    %7 = vector.broadcast %cst_5 : f32 to vector<16x256xf32>
    %8 = arith.mulf %7, %6 : vector<16x256xf32>
    %9 = arith.maximumf %6, %8 : vector<16x256xf32>
    %10 = arith.truncf %9 : vector<16x256xf32> to vector<16x256xbf16>
    %c0_6 = arith.constant 0 : index
    %c0_7 = arith.constant 0 : index
    %11 = vector.load %arg4[%c0_6, %c0_7] : memref<256x256xbf16, #tpu.memory_space<vmem>>, vector<256x256xbf16>
    %cst_8 = arith.constant dense<0.000000e+00> : vector<16x256xf32>
    %12 = tpu.matmul %10, %11, %cst_8 {dimension_numbers = #tpu.dot_dimension_numbers<[1], [0], [0], [1], [0, 0, 1, 1], [], []>} : vector<16x256xbf16>, vector<256x256xbf16>, vector<16x256xf32> -> vector<16x256xf32>
    %c0_9 = arith.constant 0 : index
    %c0_10 = arith.constant 0 : index
    %13 = vector.load %arg5[%c0_9, %c0_10] : memref<1x256xf32, #tpu.memory_space<vmem>>, vector<1x256xf32>
    %14 = vector.broadcast %13 : vector<1x256xf32> to vector<16x256xf32>
    %15 = arith.addf %12, %14 : vector<16x256xf32>
    %cst_11 = arith.constant 2.000000e-01 : f32
    %16 = vector.broadcast %cst_11 : f32 to vector<16x256xf32>
    %17 = arith.mulf %16, %15 : vector<16x256xf32>
    %18 = arith.maximumf %15, %17 : vector<16x256xf32>
    %19 = arith.truncf %18 : vector<16x256xf32> to vector<16x256xbf16>
    %c0_12 = arith.constant 0 : index
    %c0_13 = arith.constant 0 : index
    %20 = vector.load %arg6[%c0_12, %c0_13] : memref<256x128xbf16, #tpu.memory_space<vmem>>, vector<256x128xbf16>
    %cst_14 = arith.constant dense<0.000000e+00> : vector<16x128xf32>
    %21 = tpu.matmul %19, %20, %cst_14 {dimension_numbers = #tpu.dot_dimension_numbers<[1], [0], [0], [1], [0, 0, 1, 1], [], []>} : vector<16x256xbf16>, vector<256x128xbf16>, vector<16x128xf32> -> vector<16x128xf32>
    %c0_15 = arith.constant 0 : index
    %c0_16 = arith.constant 0 : index
    %22 = vector.load %arg7[%c0_15, %c0_16] : memref<1x128xf32, #tpu.memory_space<vmem>>, vector<1x128xf32>
    %23 = vector.broadcast %22 : vector<1x128xf32> to vector<16x128xf32>
    %24 = arith.addf %21, %23 : vector<16x128xf32>
    %cst_17 = arith.constant dense<0xFF800000> : vector<16xf32>
    %25 = vector.multi_reduction <maximumf>, %24, %cst_17 [1] : vector<16x128xf32> to vector<16xf32>
    %26 = vector.shape_cast %25 : vector<16xf32> to vector<16x1xf32>
    %27 = vector.broadcast %26 : vector<16x1xf32> to vector<16x128xf32>
    %28 = arith.subf %24, %27 : vector<16x128xf32>
    %29 = math.exp %28 : vector<16x128xf32>
    %cst_18 = arith.constant dense<0.000000e+00> : vector<16xf32>
    %30 = vector.multi_reduction <add>, %29, %cst_18 [1] : vector<16x128xf32> to vector<16xf32>
    %31 = vector.shape_cast %30 : vector<16xf32> to vector<16x1xf32>
    %32 = tpu.reciprocal %31 {approx = true} : vector<16x1xf32> -> vector<16x1xf32>
    %33 = vector.broadcast %32 : vector<16x1xf32> to vector<16x128xf32>
    %34 = arith.mulf %29, %33 : vector<16x128xf32>
    %35 = arith.truncf %34 : vector<16x128xf32> to vector<16x128xbf16>
    %c0_19 = arith.constant 0 : index
    %c0_20 = arith.constant 0 : index
    %36 = vector.load %arg8[%c0_19, %c0_20] : memref<16x128xbf16, #tpu.memory_space<vmem>>, vector<16x128xbf16>
    tpu.vector_store %arg8[%c0_19, %c0_20], %35 {strides = array<i32>} : memref<16x128xbf16, #tpu.memory_space<vmem>>, vector<16x128xbf16>,
    return
  }
  func.func @transform_0(%arg0: i32) -> (i32, i32) {
    %c0_i32 = arith.constant 0 : i32
    %c0_i32_0 = arith.constant 0 : i32
    return %arg0, %c0_i32 : i32, i32
  }
  func.func @transform_1(%arg0: i32) -> (i32, i32) {
    %c0_i32 = arith.constant 0 : i32
    %c0_i32_0 = arith.constant 0 : i32
    %c0_i32_1 = arith.constant 0 : i32
    return %c0_i32, %c0_i32_0 : i32, i32
  }
  func.func @transform_2(%arg0: i32) -> (i32, i32) {
    %c0_i32 = arith.constant 0 : i32
    %c0_i32_0 = arith.constant 0 : i32
    %c0_i32_1 = arith.constant 0 : i32
    return %c0_i32, %c0_i32_0 : i32, i32
  }
  func.func @transform_3(%arg0: i32) -> (i32, i32) {
    %c0_i32 = arith.constant 0 : i32
    %c0_i32_0 = arith.constant 0 : i32
    %c0_i32_1 = arith.constant 0 : i32
    return %c0_i32, %c0_i32_0 : i32, i32
  }
  func.func @transform_4(%arg0: i32) -> (i32, i32) {
    %c0_i32 = arith.constant 0 : i32
    %c0_i32_0 = arith.constant 0 : i32
    %c0_i32_1 = arith.constant 0 : i32
    return %c0_i32, %c0_i32_0 : i32, i32
  }
  func.func @transform_5(%arg0: i32) -> (i32, i32) {
    %c0_i32 = arith.constant 0 : i32
    %c0_i32_0 = arith.constant 0 : i32
    %c0_i32_1 = arith.constant 0 : i32
    return %c0_i32, %c0_i32_0 : i32, i32
  }
  func.func @transform_6(%arg0: i32) -> (i32, i32) {
    %c0_i32 = arith.constant 0 : i32
    %c0_i32_0 = arith.constant 0 : i32
    %c0_i32_1 = arith.constant 0 : i32
    return %c0_i32, %c0_i32_0 : i32, i32
  }
  func.func @transform_7(%arg0: i32) -> (i32, i32) {
    %c0_i32 = arith.constant 0 : i32
    %c0_i32_0 = arith.constant 0 : i32
    return %arg0, %c0_i32 : i32, i32
  }
}

</mosaic_0001>

<bundles_post_ra>
// kernel: discriminator_forward.1
= control target key start
LH: loop header
LB: loop body
LE: loop exit
PB: predicated region body
PF: predicated region fallthrough
CT: control target
= control target key end

     0   :  { %12 = vsyncpa [#allocation3], 0  ;;  %s1937_s0 = inlined_call_operand.vmem [shape: f32[16,784], index: 0, kind: input, shape index: {}]   ;;  %s1938_s1 = inlined_call_operand.hbm [shape: bf16[784,256], index: 1, kind: input, shape index: {}]   ;;  %s1939_s2 = inlined_call_operand.vmem [shape: f32[1,256], index: 2, kind: input, shape index: {}]   ;;  %s1940_s3 = inlined_call_operand.hbm [shape: bf16[256,256], index: 3, kind: input, shape index: {}]   ;;  %s1941_s4 = inlined_call_operand.vmem [shape: f32[1,256], index: 4, kind: input, shape index: {}]   ;;  %s1942_s5 = inlined_call_operand.vmem [shape: bf16[256,128], index: 5, kind: input, shape index: {}]   ;;  %s1943_s6 = inlined_call_operand.vmem [shape: f32[1,128], index: 6, kind: input, shape index: {}]   ;;  %s1944_s7 = inlined_call_operand.vmem [shape: bf16[16,128], index: 7, kind: output, shape index: {}]  }
   0x1   :  { %13 = vsyncpa [#allocation5], 0  ;;  %s1776_s24 = smov [#allocation2]  }
   0x2   :  { %s21_s25 = sshll.u32 %s1776_s24, 4  ;;  %s22_s25 = int_to_ptr.vmem [resolvable:$true] %s21_s25 }
   0x3   :  { %s1740_s26 = scalar_lea.vmem %s22_s25, 12544  ;;  %p1745_p1 = scmp.lt.s32.totalorder %s22_s25, %s22_s25 }
   0x4   :  { %p1741_p0 = scmp.ne.s32.totalorder %s22_s25, %s1740_s26  ;;  %p1746_p2 = scmp.lt.s32.totalorder %s1740_s26, %s1740_s26 }
   0x6   :  { %p1747_p3 = por %p1746_p2, %p1745_p1 }
   0x8   :  { %p1748_p4 = pnand %p1747_p3, %p1741_p0 }
   0xa   :  { %1751 = shalt.err (!%p1748_p4)
}
   0xb   :  { %s1777_s27 = smov 128   ;;  %s1778_s28 = smov 8  }
   0xc   :  { %27 = dma.hbm_to_vmem [thread:$0]  %s1938_s1, 12544, %s22_s25, [#allocation3], %s1777_s27, %s1777_s27, %s1778_s28  }
   0xd   :  { %s1779_s8 = smov [#allocation4]  }
   0xe   :  { %s35_s9 = sshll.u32 %s1779_s8, 4  ;;  %s36_s9 = int_to_ptr.vmem [resolvable:$true] %s35_s9 }
   0xf   :  { %s1760_s10 = scalar_lea.vmem %s36_s9, 4096  ;;  %p1765_p6 = scmp.lt.s32.totalorder %s36_s9, %s36_s9 }
  0x10   :  { %p1761_p5 = scmp.ne.s32.totalorder %s36_s9, %s1760_s10  ;;  %p1766_p7 = scmp.lt.s32.totalorder %s1760_s10, %s1760_s10 }
  0x12   :  { %p1767_p8 = por %p1766_p7, %p1765_p6 }
  0x14   :  { %p1768_p9 = pnand %p1767_p8, %p1761_p5 }
  0x16   :  { %1771 = shalt.err (!%p1768_p9)
}
  0x17   :  { %41 = dma.hbm_to_vmem [thread:$0]  %s1940_s3, 4096, %s36_s9, [#allocation5], %s1777_s27, %s1777_s27, %s1778_s28  }
  0x18   :  { %1772 = dma.done.wait [#allocation3], 12544  }
  0x19   :  { %1773 = vsyncadd [#allocation3], 4294954752 }
  0x1a   :  { %1774 = dma.done.wait [#allocation5], 4096  }
  0x1b   :  { %1775 = vsyncadd [#allocation5], 4294963200  ;;  %v1513_v0 = vld [vmem:[#allocation2 + $0x74] ss:$8 sps:$4 sm:$0xff]   ;;  %v1515_v1 = vld [vmem:[#allocation2 + $0x70] ss:$8 sps:$4 sm:$0xff]  }
  0x1c   :  { %680 = vmatprep.subr.bf16.mxu0 %v1513_v0  ;;  %v1516_v2 = vld [vmem:[#allocation2 + $0x174] ss:$8 sps:$4 sm:$0xff]   ;;  %v1518_v3 = vld [vmem:[#allocation2 + $0x170] ss:$8 sps:$4 sm:$0xff]   ;;  %v1519_v4 = vld [vmem:[#allocation2 + $0x64] ss:$8 sps:$4 sm:$0xff]  }
  0x1d   :  { %681 = vmatpush1.bf16.msra.mxu0 %v1515_v1  ;;  %v1521_v5 = vld [vmem:[#allocation2 + $0x60] ss:$8 sps:$4 sm:$0xff]   ;;  %723 = vmatprep.subr.bf16.mxu1 %v1516_v2  ;;  %v1522_v6 = vld [vmem:[#allocation2 + $0x164] ss:$8 sps:$4 sm:$0xff]   ;;  %v1525_v8 = vld [vmem:[#allocation2 + $0x54] ss:$8 sps:$4 sm:$0xff]  }
  0x1e   :  { %724 = vmatpush1.bf16.msra.mxu1 %v1518_v3  ;;  %682 = vmatprep.subr.bf16.mxu0 %v1519_v4  ;;  %v1524_v7 = vld [vmem:[#allocation2 + $0x160] ss:$8 sps:$4 sm:$0xff]   ;;  %v1527_v9 = vld [vmem:[#allocation2 + $0x50] ss:$8 sps:$4 sm:$0xff]   ;;  %v1528_v10 = vld [vmem:[#allocation2 + $0x154] ss:$8 sps:$4 sm:$0xff]  }
  0x1f   :  { %725 = vmatprep.subr.bf16.mxu1 %v1522_v6  ;;  %v1531_v11 = vld [vmem:[#allocation2 + $0x44] ss:$8 sps:$4 sm:$0xff]   ;;  %v1530_v12 = vld [vmem:[#allocation2 + $0x150] ss:$8 sps:$4 sm:$0xff]   ;;  %v1533_v14 = vld [vmem:[#allocation2 + $0x40] ss:$8 sps:$4 sm:$0xff]  }
  0x20   :  { %v1534_v13 = vld [vmem:[#allocation2 + $0x144] ss:$8 sps:$4 sm:$0xff]   ;;  %v1537_v15 = vld [vmem:[#allocation2 + $0x34] ss:$8 sps:$4 sm:$0xff]   ;;  %v1536_v16 = vld [vmem:[#allocation2 + $0x140] ss:$8 sps:$4 sm:$0xff]  }
  0x21   :  { %683 = vmatpush1.bf16.msra.mxu0 %v1521_v5  ;;  %v1540_v17 = vld [vmem:[#allocation2 + $0x134] ss:$8 sps:$4 sm:$0xff]   ;;  %v1539_v18 = vld [vmem:[#allocation2 + $0x30] ss:$8 sps:$4 sm:$0xff]   ;;  %v1543_v19 = vld [vmem:[#allocation2 + $0x24] ss:$8 sps:$4 sm:$0xff]  }
  0x22   :  { %684 = vmatprep.subr.bf16.mxu0 %v1525_v8  ;;  %726 = vmatpush1.bf16.msra.mxu1 %v1524_v7  ;;  %v1542_v20 = vld [vmem:[#allocation2 + $0x130] ss:$8 sps:$4 sm:$0xff]   ;;  %v1546_v21 = vld [vmem:[#allocation2 + $0x124] ss:$8 sps:$4 sm:$0xff]   ;;  %v1545_v22 = vld [vmem:[#allocation2 + $0x20] ss:$8 sps:$4 sm:$0xff]  }
  0x23   :  { %727 = vmatprep.subr.bf16.mxu1 %v1528_v10  ;;  %v1549_v23 = vld [vmem:[#allocation2 + $0x14] ss:$8 sps:$4 sm:$0xff]   ;;  %v1548_v24 = vld [vmem:[#allocation2 + $0x120] ss:$8 sps:$4 sm:$0xff]   ;;  %v1551_v26 = vld [vmem:[#allocation2 + $0x10] ss:$8 sps:$4 sm:$0xff]  }
  0x24   :  { %v1552_v25 = vld [vmem:[#allocation2 + $0x114] ss:$8 sps:$4 sm:$0xff]   ;;  %v1555_v27 = vld [vmem:[#allocation2 + $0x4] ss:$8 sps:$4 sm:$0xff]   ;;  %v1554_v28 = vld [vmem:[#allocation2 + $0x110] ss:$8 sps:$4 sm:$0xff]  }
  0x25   :  { %685 = vmatpush1.bf16.msra.mxu0 %v1527_v9  ;;  %v1558_v29 = vld [vmem:[#allocation2 + $0x104] ss:$8 sps:$4 sm:$0xff]   ;;  %v1557_v30 = vld [vmem:[#allocation2] ss:$8 sps:$4 sm:$0xff]   ;;  %v1561_v31 = vld [vmem:[#allocation2 + $0xf4] ss:$8 sps:$4 sm:$0xff]  }
  0x26   :  { %686 = vmatprep.subr.bf16.mxu0 %v1531_v11  ;;  %728 = vmatpush1.bf16.msra.mxu1 %v1530_v12  ;;  %v1560_v32 = vld [vmem:[#allocation2 + $0x100] ss:$8 sps:$4 sm:$0xff]   ;;  %v1564_v33 = vld [vmem:[#allocation2 + $0x1f4] ss:$8 sps:$4 sm:$0xff]   ;;  %v1563_v34 = vld [vmem:[#allocation2 + $0xf0] ss:$8 sps:$4 sm:$0xff]  }
  0x27   :  { %729 = vmatprep.subr.bf16.mxu1 %v1534_v13  ;;  %v1567_v35 = vld [vmem:[#allocation2 + $0xe4] ss:$8 sps:$4 sm:$0xff]   ;;  %v1566_v36 = vld [vmem:[#allocation2 + $0x1f0] ss:$8 sps:$4 sm:$0xff]   ;;  %v1569_v38 = vld [vmem:[#allocation2 + $0xe0] ss:$8 sps:$4 sm:$0xff]  }
  0x28   :  { %v1570_v37 = vld [vmem:[#allocation2 + $0x1e4] ss:$8 sps:$4 sm:$0xff]   ;;  %v1573_v39 = vld [vmem:[#allocation2 + $0xd4] ss:$8 sps:$4 sm:$0xff]   ;;  %v1572_v40 = vld [vmem:[#allocation2 + $0x1e0] ss:$8 sps:$4 sm:$0xff]  }
  0x29   :  { %687 = vmatpush1.bf16.msra.mxu0 %v1533_v14  ;;  %v1576_v41 = vld [vmem:[#allocation2 + $0x1d4] ss:$8 sps:$4 sm:$0xff]   ;;  %v1575_v42 = vld [vmem:[#allocation2 + $0xd0] ss:$8 sps:$4 sm:$0xff]   ;;  %v1579_v43 = vld [vmem:[#allocation2 + $0xc4] ss:$8 sps:$4 sm:$0xff]  }
  0x2a   :  { %688 = vmatprep.subr.bf16.mxu0 %v1537_v15  ;;  %730 = vmatpush1.bf16.msra.mxu1 %v1536_v16  ;;  %v1578_v44 = vld [vmem:[#allocation2 + $0x1d0] ss:$8 sps:$4 sm:$0xff]   ;;  %v1582_v45 = vld [vmem:[#allocation2 + $0x1c4] ss:$8 sps:$4 sm:$0xff]   ;;  %v1581_v48 = vld [vmem:[#allocation2 + $0xc0] ss:$8 sps:$4 sm:$0xff]  }
  0x2b   :  { %731 = vmatprep.subr.bf16.mxu1 %v1540_v17  ;;  %v56_v46 = vld [vmem:[%s1937_s0 + $0x8] sm:$0xff]  ;;  %v63_v47 = vld [vmem:[%s1937_s0 + $0x40] sm:$0xff]  ;;  %v1585_v50 = vld [vmem:[#allocation2 + $0xb4] ss:$8 sps:$4 sm:$0xff]   ;;  %vm676_vm0 = vcmask 130048  }
  0x2c   :  { %v70_v49 = vpack.c.bf16 %v63_v47, %v56_v46  ;;  %v1584_v51 = vld [vmem:[#allocation2 + $0x1c0] ss:$8 sps:$4 sm:$0xff]   ;;  %v58_v52 = vld [vmem:[%s1937_s0 + $0x18] sm:$0xff]  ;;  %v65_v53 = vld [vmem:[%s1937_s0 + $0x50] sm:$0xff] }
  0x2d   :  { %689 = vmatpush1.bf16.msra.mxu0 %v1539_v18  ;;  %v1588_v54 = vld [vmem:[#allocation2 + $0x1b4] ss:$8 sps:$4 sm:$0xff]   ;;  %v72_v55 = vpack.c.bf16 %v65_v53, %v58_v52  ;;  %v1587_v56 = vld [vmem:[#allocation2 + $0xb0] ss:$8 sps:$4 sm:$0xff]   ;;  %v1591_v57 = vld [vmem:[#allocation2 + $0xa4] ss:$8 sps:$4 sm:$0xff]  }
  0x2e   :  { %690 = vmatprep.subr.bf16.mxu0 %v1543_v19  ;;  %732 = vmatpush1.bf16.msra.mxu1 %v1542_v20  ;;  %v1590_v58 = vld [vmem:[#allocation2 + $0x1b0] ss:$8 sps:$4 sm:$0xff]   ;;  %v1594_v59 = vld [vmem:[#allocation2 + $0x1a4] ss:$8 sps:$4 sm:$0xff]   ;;  %v1593_v60 = vld [vmem:[#allocation2 + $0xa0] ss:$8 sps:$4 sm:$0xff]  }
  0x2f   :  { %733 = vmatprep.subr.bf16.mxu1 %v1546_v21  ;;  %712 = vmatprep.mubr.bf16.mxu0 %v70_v49  ;;  %v1597_v61 = vld [vmem:[#allocation2 + $0x94] ss:$8 sps:$4 sm:$0xff]   ;;  %v1596_v62 = vld [vmem:[#allocation2 + $0x1a0] ss:$8 sps:$4 sm:$0xff]   ;;  %v1599_v0 = vld [vmem:[#allocation2 + $0x90] ss:$8 sps:$4 sm:$0xff]  }
  0x30   :  { %755 = vmatprep.mubr.bf16.mxu1 %v72_v55  ;;  %v1600_v63 = vld [vmem:[#allocation2 + $0x194] ss:$8 sps:$4 sm:$0xff]   ;;  %v1602_v1 = vld [vmem:[#allocation2 + $0x190] ss:$8 sps:$4 sm:$0xff]   ;;  %v1603_v2 = vld [vmem:[#allocation2 + $0x84] ss:$8 sps:$4 sm:$0xff]  }
  0x31   :  { %691 = vmatpush1.bf16.msra.mxu0 %v1545_v22  ;;  %v1605_v3 = vld [vmem:[#allocation2 + $0x80] ss:$8 sps:$4 sm:$0xff]   ;;  %v1606_v4 = vld [vmem:[#allocation2 + $0x184] ss:$8 sps:$4 sm:$0xff]   ;;  %v62_v7 = vld [vmem:[%s1937_s0 + $0x38] sm:$0xff]  ;;  %v1780_v21 = vmov 0  }
  0x32   :  { %692 = vmatprep.subr.bf16.mxu0 %v1549_v23  ;;  %734 = vmatpush1.bf16.msra.mxu1 %v1548_v24  ;;  %v55_v5 = vld [vmem:[%s1937_s0] sm:$0xff]  ;;  %v1611_v8 = vld [vmem:[#allocation2 + $0x274] ss:$8 sps:$4 sm:$0xff]   ;;  %v64_v10 = vld [vmem:[%s1937_s0 + $0x48] sm:$0xff] }
  0x33   :  { %735 = vmatprep.subr.bf16.mxu1 %v1552_v25  ;;  %v1608_v6 = vld [vmem:[#allocation2 + $0x180] ss:$8 sps:$4 sm:$0xff]   ;;  %v57_v9 = vld [vmem:[%s1937_s0 + $0x10] sm:$0xff]  ;;  %v69_v11 = vpack.c.bf16 %v62_v7, %v55_v5  ;;  %v1614_v14 = vld [vmem:[#allocation2 + $0x264] ss:$8 sps:$4 sm:$0xff]  }
  0x34   :  { %v1609_v12 = vld [vmem:[#allocation2 + $0x270] ss:$8 sps:$4 sm:$0xff]   ;;  %v71_v13 = vpack.c.bf16 %v64_v10, %v57_v9  ;;  %v1654_v15 = vld [vmem:[#allocation2 + $0x300] ss:$8 sps:$4 sm:$0xff]   ;;  %v1656_v16 = vld [vmem:[#allocation2 + $0x304] ss:$8 sps:$4 sm:$0xff]  }
  0x35   :  { %693 = vmatpush1.bf16.msra.mxu0 %v1551_v26  ;;  %v1612_v17 = vld [vmem:[#allocation2 + $0x260] ss:$8 sps:$4 sm:$0xff]   ;;  %v1617_v18 = vld [vmem:[#allocation2 + $0x254] ss:$8 sps:$4 sm:$0xff]   ;;  %v1615_v20 = vld [vmem:[#allocation2 + $0x250] ss:$8 sps:$4 sm:$0xff]  }
  0x36   :  { %694 = vmatprep.subr.bf16.mxu0 %v1555_v27  ;;  %736 = vmatpush1.bf16.msra.mxu1 %v1554_v28  ;;  %v60_v19 = vld [vmem:[%s1937_s0 + $0x28] sm:$0xff]  ;;  %v61_v22 = vld [vmem:[%s1937_s0 + $0x30] sm:$0xff]  ;;  %v67_v24 = vld [vmem:[%s1937_s0 + $0x60] sm:$0xff] }
  0x37   :  { %737 = vmatprep.subr.bf16.mxu1 %v1558_v29  ;;  %v68_v23 = vld [vmem:[%s1937_s0 + $0x68] sm:$0xff]  ;;  %v74_v26 = vpack.c.bf16 %v67_v24, %v60_v19  ;;  %v1623_v29 = vld [vmem:[#allocation2 + $0x234] ss:$8 sps:$4 sm:$0xff]   ;;  %v1645_v46 = vld [vmem:[#allocation2 + $0x2b0] ss:$8 sps:$4 sm:$0xff]  }
  0x38   :  { %v1620_v25 = vld [vmem:[#allocation2 + $0x244] ss:$8 sps:$4 sm:$0xff]   ;;  %v75_v27 = vpack.c.bf16 %v68_v23, %v61_v22  ;;  %v1618_v28 = vld [vmem:[#allocation2 + $0x240] ss:$8 sps:$4 sm:$0xff]   ;;  %v1653_v49 = vld [vmem:[#allocation2 + $0x294] ss:$8 sps:$4 sm:$0xff]  }
  0x39   :  { %695 = vmatpush1.bf16.msra.mxu0 %v1557_v30  ;;  %v1621_v30 = vld [vmem:[#allocation2 + $0x230] ss:$8 sps:$4 sm:$0xff]   ;;  %v1650_v47 = vld [vmem:[#allocation2 + $0x2a4] ss:$8 sps:$4 sm:$0xff]   ;;  %v1657_v52 = vld [vmem:[#allocation2 + $0x280] ss:$8 sps:$4 sm:$0xff]  }
  0x3a   :  { %696 = vmatprep.subr.bf16.mxu0 %v1561_v31  ;;  %738 = vmatpush1.bf16.msra.mxu1 %v1560_v32  ;;  %v1626_v31 = vld [vmem:[#allocation2 + $0x224] ss:$8 sps:$4 sm:$0xff]   ;;  %v1624_v32 = vld [vmem:[#allocation2 + $0x220] ss:$8 sps:$4 sm:$0xff]   ;;  %v1681_v7 = vld [vmem:[#allocation4] ss:$8 sps:$4 sm:$0xff]  }
  0x3b   :  { %739 = vmatprep.subr.bf16.mxu1 %v1564_v33  ;;  %v1629_v33 = vld [vmem:[#allocation2 + $0x214] ss:$8 sps:$4 sm:$0xff]   ;;  %v59_v53 = vld [vmem:[%s1937_s0 + $0x20] sm:$0xff]  ;;  %v1699_v19 = vld [vmem:[#allocation4 + $0xa0] ss:$8 sps:$4 sm:$0xff]  }
  0x3c   :  { %v1678_v5 = vld [vmem:[#allocation4 + $0x10] ss:$8 sps:$4 sm:$0xff]   ;;  %v1689_v10 = vld [vmem:[#allocation4 + $0xe4] ss:$8 sps:$4 sm:$0xff]   ;;  %v1705_v23 = vld [vmem:[#allocation4 + $0x80] ss:$8 sps:$4 sm:$0xff]  }
  0x3d   :  { %697 = vmatpush2.bf16.msra.mxu0 %v1563_v34  ;;  %v1627_v34 = vld [vmem:[#allocation2 + $0x210] ss:$8 sps:$4 sm:$0xff]   ;;  %v1684_v9 = vld [vmem:[#allocation4 + $0xf0] ss:$8 sps:$4 sm:$0xff]   ;;  %v1707_v22 = vld [vmem:[#allocation4 + $0x84] ss:$8 sps:$4 sm:$0xff]  }
  0x3e   :  { %698 = vmatprep.subr.bf16.mxu0 %v1567_v35  ;;  %740 = vmatpush2.bf16.msra.mxu1 %v1566_v36  ;;  %v1632_v35 = vld [vmem:[#allocation2 + $0x204] ss:$8 sps:$4 sm:$0xff]   ;;  %v1630_v36 = vld [vmem:[#allocation2 + $0x200] ss:$8 sps:$4 sm:$0xff]   ;;  %v1708_v24 = vld [vmem:[%s1942_s5 + $0x78] sm:$0xff]  }
  0x3f   :  { %741 = vmatprep.subr.bf16.mxu1 %v1570_v37  ;;  %v1635_v37 = vld [vmem:[#allocation2 + $0x2f4] ss:$8 sps:$4 sm:$0xff]  }
  0x41   :  { %699 = vmatpush2.bf16.msra.mxu0 %v1569_v38  ;;  %v1633_v38 = vld [vmem:[#allocation2 + $0x2f0] ss:$8 sps:$4 sm:$0xff]  }
  0x42   :  { %700 = vmatprep.subr.bf16.mxu0 %v1573_v39  ;;  %742 = vmatpush2.bf16.msra.mxu1 %v1572_v40  ;;  %v1638_v39 = vld [vmem:[#allocation2 + $0x2e4] ss:$8 sps:$4 sm:$0xff]   ;;  %v1636_v40 = vld [vmem:[#allocation2 + $0x2e0] ss:$8 sps:$4 sm:$0xff]  }
  0x43   :  { %743 = vmatprep.subr.bf16.mxu1 %v1576_v41  ;;  %v1641_v41 = vld [vmem:[#allocation2 + $0x2d4] ss:$8 sps:$4 sm:$0xff]  }
  0x45   :  { %701 = vmatpush2.bf16.msra.mxu0 %v1575_v42  ;;  %v1639_v42 = vld [vmem:[#allocation2 + $0x2d0] ss:$8 sps:$4 sm:$0xff]  }
  0x46   :  { %702 = vmatprep.subr.bf16.mxu0 %v1579_v43  ;;  %744 = vmatpush2.bf16.msra.mxu1 %v1578_v44  ;;  %v1644_v43 = vld [vmem:[#allocation2 + $0x2c4] ss:$8 sps:$4 sm:$0xff]   ;;  %v1642_v44 = vld [vmem:[#allocation2 + $0x2c0] ss:$8 sps:$4 sm:$0xff]  }
  0x47   :  { %745 = vmatprep.subr.bf16.mxu1 %v1582_v45  ;;  %v1647_v45 = vld [vmem:[#allocation2 + $0x2b4] ss:$8 sps:$4 sm:$0xff]  }
  0x49   :  { %703 = vmatpush2.bf16.msra.mxu0 %v1581_v48  ;;  %v1648_v48 = vld [vmem:[#allocation2 + $0x2a0] ss:$8 sps:$4 sm:$0xff]  }
  0x4a   :  { %704 = vmatprep.subr.bf16.mxu0 %v1585_v50  ;;  %746 = vmatpush2.bf16.msra.mxu1 %v1584_v51  ;;  %v1651_v50 = vld [vmem:[#allocation2 + $0x290] ss:$8 sps:$4 sm:$0xff]   ;;  %v1659_v51 = vld [vmem:[#allocation2 + $0x284] ss:$8 sps:$4 sm:$0xff]  }
  0x4b   :  { %747 = vmatprep.subr.bf16.mxu1 %v1588_v54  ;;  %v66_v54 = vld [vmem:[%s1937_s0 + $0x58] sm:$0xff] }
  0x4c   :  { %v73_v55 = vpack.c.bf16 %v66_v54, %v59_v53 }
  0x4d   :  { %705 = vmatpush2.bf16.msra.mxu0 %v1587_v56  ;;  %v1660_v56 = vld [vmem:[#allocation4 + $0x70] ss:$8 sps:$4 sm:$0xff]  }
  0x4e   :  { %706 = vmatprep.subr.bf16.mxu0 %v1591_v57  ;;  %748 = vmatpush2.bf16.msra.mxu1 %v1590_v58  ;;  %v1662_v57 = vld [vmem:[#allocation4 + $0x74] ss:$8 sps:$4 sm:$0xff]   ;;  %v1665_v58 = vld [vmem:[#allocation4 + $0x64] ss:$8 sps:$4 sm:$0xff]  }
  0x4f   :  { %749 = vmatprep.subr.bf16.mxu1 %v1594_v59  ;;  %v1663_v59 = vld [vmem:[#allocation4 + $0x60] ss:$8 sps:$4 sm:$0xff]  }
  0x51   :  { %707 = vmatpush2.bf16.msra.mxu0 %v1593_v60  ;;  %v1668_v60 = vld [vmem:[#allocation4 + $0x54] ss:$8 sps:$4 sm:$0xff]  }
  0x52   :  { %708 = vmatprep.subr.bf16.mxu0 %v1597_v61  ;;  %750 = vmatpush2.bf16.msra.mxu1 %v1596_v62  ;;  %v1666_v61 = vld [vmem:[#allocation4 + $0x50] ss:$8 sps:$4 sm:$0xff]   ;;  %v1671_v62 = vld [vmem:[#allocation4 + $0x44] ss:$8 sps:$4 sm:$0xff]  }
  0x53   :  { %751 = vmatprep.subr.bf16.mxu1 %v1600_v63  ;;  %v1669_v63 = vld [vmem:[#allocation4 + $0x40] ss:$8 sps:$4 sm:$0xff]  }
  0x55   :  { %709 = vmatpush2.bf16.msra.mxu0 %v1599_v0  ;;  %v1674_v0 = vld [vmem:[#allocation4 + $0x34] ss:$8 sps:$4 sm:$0xff]  }
  0x56   :  { %710 = vmatprep.subr.bf16.mxu0 %v1603_v2  ;;  %752 = vmatpush2.bf16.msra.mxu1 %v1602_v1  ;;  %v1672_v1 = vld [vmem:[#allocation4 + $0x30] ss:$8 sps:$4 sm:$0xff]   ;;  %v1677_v2 = vld [vmem:[#allocation4 + $0x24] ss:$8 sps:$4 sm:$0xff]  }
  0x57   :  { %753 = vmatprep.subr.bf16.mxu1 %v1606_v4  ;;  %v1680_v4 = vld [vmem:[#allocation4 + $0x14] ss:$8 sps:$4 sm:$0xff]  }
  0x59   :  { %711 = vmatpush2.bf16.msra.mxu0 %v1605_v3  ;;  %v1675_v3 = vld [vmem:[#allocation4 + $0x20] ss:$8 sps:$4 sm:$0xff]  }
  0x5a   :  { %766 = vmatprep.subr.bf16.mxu0 %v1611_v8  ;;  %754 = vmatpush2.bf16.msra.mxu1 %v1608_v6  ;;  %v1683_v6 = vld [vmem:[#allocation4 + $0x4] ss:$8 sps:$4 sm:$0xff]   ;;  %v1686_v8 = vld [vmem:[#allocation4 + $0xf4] ss:$8 sps:$4 sm:$0xff]  }
  0x5b   :  { %823 = vmatprep.subr.bf16.mxu1 %v1656_v16  ;;  %v1698_v16 = vld [vmem:[#allocation4 + $0xb4] ss:$8 sps:$4 sm:$0xff]  }
  0x5c   :  { %713 = vmatmul.mubr.bf16.vlgmr.msra.gmra.mxu0 %v69_v11  ;;  %v1687_v11 = vld [vmem:[#allocation4 + $0xe0] ss:$8 sps:$4 sm:$0xff]  }
  0x5d   :  { %767 = vmatpush1.bf16.msra.mxu0 %v1609_v12  ;;  %756 = vmatmul.mubr.bf16.vlgmr.msra.gmra.mxu1 %v71_v13  ;;  %v1692_v12 = vld [vmem:[#allocation4 + $0xd4] ss:$8 sps:$4 sm:$0xff]   ;;  %v1690_v13 = vld [vmem:[#allocation4 + $0xd0] ss:$8 sps:$4 sm:$0xff]  }
  0x5e   :  { %768 = vmatprep.subr.bf16.mxu0 %v1614_v14  ;;  %841 = vmatprep.mubr.bf16.mxu1 %v1780_v21  ;;  %v1695_v14 = vld [vmem:[#allocation4 + $0xc4] ss:$8 sps:$4 sm:$0xff]   ;;  %v1702_v21 = vld [vmem:[#allocation4 + $0x90] ss:$8 sps:$4 sm:$0xff]  }
  0x5f   :  { %824 = vmatpush1.bf16.msra.mxu1 %v1654_v15  ;;  %798 = vmatprep.mubr.bf16.mxu0 %v74_v26  ;;  %v1693_v15 = vld [vmem:[#allocation4 + $0xc0] ss:$8 sps:$4 sm:$0xff]  }
  0x60   :  { %1066 = vmatprep.subr.bf16.mxu1 %v1662_v57  ;;  %v1710_v26 = vld [vmem:[%s1942_s5 + $0x70] sm:$0xff]  }
  0x61   :  { %769 = vmatpush1.bf16.msra.mxu0 %v1612_v17  ;;  %v1696_v17 = vld [vmem:[#allocation4 + $0xb0] ss:$8 sps:$4 sm:$0xff]  }
  0x62   :  { %770 = vmatprep.subr.bf16.mxu0 %v1617_v18  ;;  %v1701_v18 = vld [vmem:[#allocation4 + $0xa4] ss:$8 sps:$4 sm:$0xff]  }
  0x65   :  { %771 = vmatpush1.bf16.msra.mxu0 %v1615_v20  ;;  %1427 = vmatmul.mubr.msk.bf16.vlgmr.msra.gmra.mxu1 %vm676_vm0, %v75_v27  ;;  %v1704_v20 = vld [vmem:[#allocation4 + $0x94] ss:$8 sps:$4 sm:$0xff]   ;;  %v1711_v27 = vld [vmem:[%s1942_s5 + $0x30] sm:$0xff]  }
  0x66   :  { %772 = vmatprep.subr.bf16.mxu0 %v1620_v25  ;;  %1067 = vmatpush1.bf16.msra.mxu1 %v1660_v56  ;;  %v1709_v25 = vld [vmem:[%s1942_s5 + $0x38] sm:$0xff]  }
  0x67   :  { %1068 = vmatprep.subr.bf16.mxu1 %v1665_v58 }
  0x69   :  { %773 = vmatpush1.bf16.msra.mxu0 %v1618_v28  ;;  %v1712_v28 = vld [vmem:[%s1942_s5 + $0x68] sm:$0xff]  }
  0x6a   :  { %774 = vmatprep.subr.bf16.mxu0 %v1623_v29  ;;  %1069 = vmatpush1.bf16.msra.mxu1 %v1663_v59  ;;  %v1713_v29 = vld [vmem:[%s1942_s5 + $0x28] sm:$0xff]  }
  0x6b   :  { %1070 = vmatprep.subr.bf16.mxu1 %v1668_v60 }
  0x6d   :  { %775 = vmatpush1.bf16.msra.mxu0 %v1621_v30  ;;  %v1714_v30 = vld [vmem:[%s1942_s5 + $0x60] sm:$0xff]  }
  0x6e   :  { %776 = vmatprep.subr.bf16.mxu0 %v1626_v31  ;;  %1071 = vmatpush1.bf16.msra.mxu1 %v1666_v61  ;;  %v1715_v31 = vld [vmem:[%s1942_s5 + $0x20] sm:$0xff]  }
  0x6f   :  { %1072 = vmatprep.subr.bf16.mxu1 %v1671_v62 }
  0x71   :  { %777 = vmatpush1.bf16.msra.mxu0 %v1624_v32  ;;  %v176_v32 = vlaneseq }
  0x72   :  { %778 = vmatprep.subr.bf16.mxu0 %v1629_v33  ;;  %1073 = vmatpush1.bf16.msra.mxu1 %v1669_v63 }
  0x73   :  { %1074 = vmatprep.subr.bf16.mxu1 %v1674_v0 }
  0x75   :  { %779 = vmatpush1.bf16.msra.mxu0 %v1627_v34  ;;  %v1893_v34 = vshrl.u32 %v176_v32, 7 }
  0x76   :  { %780 = vmatprep.subr.bf16.mxu0 %v1632_v35  ;;  %1075 = vmatpush1.bf16.msra.mxu1 %v1672_v1 }
  0x77   :  { %1076 = vmatprep.subr.bf16.mxu1 %v1677_v2 }
  0x79   :  { %781 = vmatpush1.bf16.msra.mxu0 %v1630_v36 }
  0x7a   :  { %782 = vmatprep.subr.bf16.mxu0 %v1635_v37  ;;  %1077 = vmatpush1.bf16.msra.mxu1 %v1675_v3  ;;  %v178_v37 = vsub.s32 0, %v1893_v34 }
  0x7b   :  { %1078 = vmatprep.subr.bf16.mxu1 %v1680_v4 }
  0x7d   :  { %783 = vmatpush2.bf16.msra.mxu0 %v1633_v38  ;;  %v174_v38 = vld [vmem:[%s1939_s2] sm:$0x3] }
  0x7e   :  { %784 = vmatprep.subr.bf16.mxu0 %v1638_v39  ;;  %1079 = vmatpush1.bf16.msra.mxu1 %v1678_v5  ;;  %v182_v39 = vsub.s32 1, %v1893_v34 }
  0x7f   :  { %1080 = vmatprep.subr.bf16.mxu1 %v1683_v6 }
  0x81   :  { %785 = vmatpush2.bf16.msra.mxu0 %v1636_v40 }
  0x82   :  { %786 = vmatprep.subr.bf16.mxu0 %v1641_v41  ;;  %1081 = vmatpush1.bf16.msra.mxu1 %v1681_v7 }
  0x83   :  { %1082 = vmatprep.subr.bf16.mxu1 %v1686_v8 }
  0x85   :  { %787 = vmatpush2.bf16.msra.mxu0 %v1639_v42  ;;  %v179_v42 = vrot.slane %v174_v38, %v178_v37 }
  0x86   :  { %788 = vmatprep.subr.bf16.mxu0 %v1644_v43  ;;  %1083 = vmatpush2.bf16.msra.mxu1 %v1684_v9  ;;  %v183_v43 = vrot.slane %v174_v38, %v182_v39 }
  0x87   :  { %1084 = vmatprep.subr.bf16.mxu1 %v1689_v10 }
  0x89   :  { %789 = vmatpush2.bf16.msra.mxu0 %v1642_v44 }
  0x8a   :  { %790 = vmatprep.subr.bf16.mxu0 %v1647_v45  ;;  %1085 = vmatpush2.bf16.msra.mxu1 %v1687_v11 }
  0x8b   :  { %1086 = vmatprep.subr.bf16.mxu1 %v1692_v12 }
  0x8d   :  { %791 = vmatpush2.bf16.msra.mxu0 %v1645_v46 }
  0x8e   :  { %792 = vmatprep.subr.bf16.mxu0 %v1650_v47  ;;  %1087 = vmatpush2.bf16.msra.mxu1 %v1690_v13 }
  0x8f   :  { %1088 = vmatprep.subr.bf16.mxu1 %v1695_v14 }
  0x91   :  { %793 = vmatpush2.bf16.msra.mxu0 %v1648_v48 }
  0x92   :  { %794 = vmatprep.subr.bf16.mxu0 %v1653_v49  ;;  %1089 = vmatpush2.bf16.msra.mxu1 %v1693_v15 }
  0x93   :  { %1090 = vmatprep.subr.bf16.mxu1 %v1698_v16 }
  0x95   :  { %795 = vmatpush2.bf16.msra.mxu0 %v1651_v50 }
  0x96   :  { %796 = vmatprep.subr.bf16.mxu0 %v1659_v51  ;;  %1091 = vmatpush2.bf16.msra.mxu1 %v1696_v17  ;;  %v1716_v17 = vld [vmem:[%s1942_s5 + $0x58] sm:$0xff]  }
  0x97   :  { %1092 = vmatprep.subr.bf16.mxu1 %v1701_v18  ;;  %v1717_v18 = vld [vmem:[%s1942_s5 + $0x18] sm:$0xff]  }
  0x99   :  { %797 = vmatpush2.bf16.msra.mxu0 %v1657_v52 }
  0x9a   :  { %1093 = vmatpush2.bf16.msra.mxu1 %v1699_v19  ;;  %1486 = vmatprep.subr.bf16.mxu0 %v1708_v24  ;;  %v1718_v19 = vld [vmem:[%s1942_s5 + $0x50] sm:$0xff]   ;;  %v1723_v24 = vld [vmem:[%s1942_s5] sm:$0xff]  }
  0x9b   :  { %1094 = vmatprep.subr.bf16.mxu1 %v1704_v20  ;;  %v1719_v20 = vld [vmem:[%s1942_s5 + $0x10] sm:$0xff]  }
  0x9c   :  { %799 = vmatmul.mubr.bf16.vlgmr.msra.gmra.mxu0 %v73_v55 }
  0x9d   :  { %1487 = vmatpush3.bf16.msra.mxu0 %v1709_v25  ;;  %v894_v25 = vld [vmem:[%s1941_s4] sm:$0x3] }
  0x9e   :  { %1095 = vmatpush2.bf16.msra.mxu1 %v1702_v21  ;;  %1488 = vmatprep.subr.bf16.mxu0 %v1710_v26  ;;  %v1720_v21 = vld [vmem:[%s1942_s5 + $0x48] sm:$0xff]   ;;  %v903_v26 = vrot.slane %v894_v25, %v182_v39 }
  0x9f   :  { %1096 = vmatprep.subr.bf16.mxu1 %v1707_v22  ;;  %v1721_v22 = vld [vmem:[%s1942_s5 + $0x8] sm:$0xff]  }
  0xa1   :  { %1489 = vmatpush3.bf16.msra.mxu0 %v1711_v27  ;;  %v899_v27 = vrot.slane %v894_v25, %v178_v37 }
  0xa2   :  { %1097 = vmatpush2.bf16.msra.mxu1 %v1705_v23  ;;  %1490 = vmatprep.subr.bf16.mxu0 %v1712_v28  ;;  %v1722_v23 = vld [vmem:[%s1942_s5 + $0x40] sm:$0xff]  }
  0xa5   :  { %1491 = vmatpush3.bf16.msra.mxu0 %v1713_v29 }
  0xa6   :  { %1492 = vmatprep.subr.bf16.mxu0 %v1714_v30 }
  0xa9   :  { %1493 = vmatpush3.bf16.msra.mxu0 %v1715_v31 }
  0xaa   :  { %1494 = vmatprep.subr.bf16.mxu0 %v1716_v17 }
  0xad   :  { %1495 = vmatpush3.bf16.msra.mxu0 %v1717_v18 }
  0xae   :  { %1496 = vmatprep.subr.bf16.mxu0 %v1718_v19 }
  0xb1   :  { %1497 = vmatpush3.bf16.msra.mxu0 %v1719_v20 }
  0xb2   :  { %1498 = vmatprep.subr.bf16.mxu0 %v1720_v21 }
  0xb5   :  { %1499 = vmatpush3.bf16.msra.mxu0 %v1721_v22 }
  0xb6   :  { %1500 = vmatprep.subr.bf16.mxu0 %v1722_v23 }
  0xb9   :  { %1501 = vmatpush3.bf16.msra.mxu0 %v1723_v24 }
 0x11c   :  { %v714_v35 = vpop.f32.mrf.mxu0 }
 0x11d   :  { %v757_v33 = vpop.f32.mrf.mxu1  ;;  %v715_v46 = vadd.f32 %v714_v35, %v179_v42 }
 0x11e   :  { %v716_v40 = vpop.f32.mrf.mxu0 }
 0x11f   :  { %v759_v36 = vpop.f32.mrf.mxu1  ;;  %v717_v48 = vadd.f32 %v716_v40, %v183_v43  ;;  %v758_v51 = vadd.f32 %v757_v33, %v715_v46 }
 0x120   :  { %v718_v44 = vpop.f32.mrf.mxu0 }
 0x121   :  { %v761_v41 = vpop.f32.mrf.mxu1  ;;  %v719_v50 = vadd.f32 %v718_v44, %v179_v42  ;;  %v760_v54 = vadd.f32 %v759_v36, %v717_v48  ;;  %v1460_v48 = vld [vmem:[%s1943_s6] ss:$0 sm:$0xff] }
 0x122   :  { %v720_v49 = vpop.f32.mrf.mxu0 }
 0x123   :  { %v763_v45 = vpop.f32.mrf.mxu1  ;;  %v721_v55 = vadd.f32 %v720_v49, %v183_v43  ;;  %v762_v58 = vadd.f32 %v761_v41, %v719_v50 }
 0x125   :  { %v843_v47 = vpop.f32.mrf.mxu1  ;;  %v764_v62 = vadd.f32 %v763_v45, %v721_v55 }
 0x127   :  { %v845_v52 = vpop.f32.mrf.mxu1 }
 0x129   :  { %v847_v60 = vpop.f32.mrf.mxu1 }
 0x12b   :  { %v849_v5 = vpop.f32.mrf.mxu1 }
 0x15c   :  { %v800_v53 = vpop.f32.mrf.mxu0 }
 0x15d   :  { %v801_v56 = vadd.f32 %v800_v53, %v758_v51 }
 0x15e   :  { %v802_v57 = vpop.f32.mrf.mxu0 }
 0x15f   :  { %v803_v59 = vadd.f32 %v802_v57, %v760_v54  ;;  %v844_v1 = vadd.f32 %v843_v47, %v801_v56 }
 0x160   :  { %v804_v61 = vpop.f32.mrf.mxu0 }
 0x161   :  { %v846_v63 = vadd.f32 %v845_v52, %v803_v59  ;;  %v805_v0 = vadd.f32 %v804_v61, %v762_v58  ;;  %v852_v9 = vmul.f32 0.2, %v844_v1 }
 0x162   :  { %v806_v2 = vpop.f32.mrf.mxu0 }
 0x163   :  { %v848_v3 = vadd.f32 %v847_v60, %v805_v0  ;;  %v807_v4 = vadd.f32 %v806_v2, %v764_v62  ;;  %v853_v6 = vmul.f32 0.2, %v846_v63  ;;  %v856_v14 = vmax.f32 %v844_v1, %v852_v9 }
 0x165   :  { %v854_v7 = vmul.f32 0.2, %v848_v3  ;;  %v850_v8 = vadd.f32 %v849_v5, %v807_v4  ;;  %v857_v12 = vmax.f32 %v846_v63, %v853_v6 }
 0x167   :  { %v855_v10 = vmul.f32 0.2, %v850_v8  ;;  %v858_v11 = vmax.f32 %v848_v3, %v854_v7 }
 0x169   :  { %v859_v13 = vmax.f32 %v850_v8, %v855_v10  ;;  %v860_v16 = vpack.c.bf16 %v858_v11, %v856_v14 }
 0x16b   :  { %v861_v15 = vpack.c.bf16 %v859_v13, %v857_v12 }
 0x16d   :  { %1098 = vmatprep.mubr.bf16.mxu1 %v861_v15 }
 0x16e   :  { %1099 = vmatmul.mubr.bf16.vlgmr.msra.gmra.mxu1 %v860_v16 }
 0x22e   :  { %v1100_v28 = vpop.f32.mrf.mxu1 }
 0x22f   :  { %v1101_v31 = vadd.f32 %v1100_v28, %v899_v27 }
 0x230   :  { %v1102_v29 = vpop.f32.mrf.mxu1 }
 0x231   :  { %v1103_v30 = vadd.f32 %v1102_v29, %v903_v26  ;;  %v1109_v41 = vmul.f32 0.2, %v1101_v31 }
 0x232   :  { %v1104_v32 = vpop.f32.mrf.mxu1 }
 0x233   :  { %v1105_v33 = vadd.f32 %v1104_v32, %v899_v27  ;;  %v1110_v36 = vmul.f32 0.2, %v1103_v30  ;;  %v1113_v46 = vmax.f32 %v1101_v31, %v1109_v41 }
 0x234   :  { %v1106_v35 = vpop.f32.mrf.mxu1 }
 0x235   :  { %v1111_v38 = vmul.f32 0.2, %v1105_v33  ;;  %v1107_v40 = vadd.f32 %v1106_v35, %v903_v26  ;;  %v1114_v44 = vmax.f32 %v1103_v30, %v1110_v36 }
 0x237   :  { %v1112_v42 = vmul.f32 0.2, %v1107_v40  ;;  %v1115_v43 = vmax.f32 %v1105_v33, %v1111_v38 }
 0x239   :  { %v1116_v45 = vmax.f32 %v1107_v40, %v1112_v42  ;;  %v1117_v47 = vpack.c.bf16 %v1115_v43, %v1113_v46 }
 0x23b   :  { %v1118_v39 = vpack.c.bf16 %v1116_v45, %v1114_v44 }
 0x23d   :  { %1286 = vmatprep.mubr.bf16.mxu0 %v1118_v39 }
 0x23e   :  { %1287 = vmatmul.mubr.bf16.vlgmr.msra.gmra.mxu0 %v1117_v47 }
 0x2fe   :  { %v1502_v34 = vpop.f32.mrf.mxu0 }
 0x300   :  { %v1503_v37 = vpop.f32.mrf.mxu0 }
 0x301   :  { %v1504_v49 = vadd.f32 %v1503_v37, %v1502_v34 }
 0x302   :  { %v1505_v50 = vpop.f32.mrf.mxu0 }
 0x303   :  { %v1289_v51 = vadd.f32 %v1504_v49, %v1460_v48 }
 0x304   :  { %v1506_v52 = vpop.f32.mrf.mxu0 }
 0x305   :  { %v1507_v53 = vadd.f32 %v1506_v52, %v1505_v50  ;;  %1295 = vmax.xlane.f32.xlu0 %v1289_v51 }
 0x307   :  { %v1292_v54 = vadd.f32 %v1507_v53, %v1460_v48 }
 0x309   :  { %1297 = vmax.xlane.f32.xlu0 %v1292_v54 }
 0x38e   :  { %v1296_v55 = vpop.xlane.xlu0 %1295 }
 0x38f   :  { %v1299_v56 = vsub.f32 %v1289_v51, %v1296_v55 }
 0x391   :  { %v1301_v57 = vmul.f32 1.442695, %v1299_v56 }
 0x392   :  { %v1298_v58 = vpop.xlane.xlu0 %1297 }
 0x393   :  { %1724 = vpow2.f32 %v1301_v57  ;;  %v1300_v59 = vsub.f32 %v1292_v54, %v1298_v58 }
 0x395   :  { %v1303_v60 = vmul.f32 1.442695, %v1300_v59 }
 0x397   :  { %1726 = vpow2.f32 %v1303_v60 }
 0x3a0   :  { %v1725_v61 = vpop.eup %1724 }
 0x3a1   :  { %1305 = vadd.xlane.f32.xlu1 %v1725_v61 }
 0x3a4   :  { %v1727_v62 = vpop.eup %1726 }
 0x3a5   :  { %1307 = vadd.xlane.f32.xlu1 %v1727_v62 }
 0x42a   :  { %v1306_v63 = vpop.xlane.xlu1 %1305 }
 0x42b   :  { %1728 = vrcp.f32 %v1306_v63 }
 0x42e   :  { %v1308_v0 = vpop.xlane.xlu1 %1307 }
 0x42f   :  { %1730 = vrcp.f32 %v1308_v0 }
 0x438   :  { %v1729_v1 = vpop.eup %1728 }
 0x439   :  { %v1311_v3 = vmul.f32 %v1729_v1, %v1725_v61 }
 0x43c   :  { %v1731_v2 = vpop.eup %1730 }
 0x43d   :  { %v1312_v4 = vmul.f32 %v1731_v2, %v1727_v62 }
 0x43f   :  { %v1484_v5 = vpack.c.bf16 %v1312_v4, %v1311_v3 }
 0x441   :  { %1485 = vst [vmem:[%s1944_s7] sm:$0xff] %v1484_v5  }
 0x442   :  { %1327 = vsyncpa [#allocation3], 1 }
 0x443   :  { %1328 = vsyncpa [#allocation5], 1 }

</bundles_post_ra>
